<compile_context>
chip_gen: v6e
topology: v6e:2x2x1
jax: 0.10.0
libtpu: 0.0.40
codegen_flags: <defaults>
</compile_context>

<pallas_src>
import functools

import jax
import jax.numpy as jnp
from jax.experimental import pallas as pl
from jax.experimental.pallas import tpu as pltpu


def _round_up(n, m):
    return (n + m - 1) // m * m


@functools.lru_cache(maxsize=None)
def _device_kind():
    try:
        return jax.devices()[0].device_kind.lower()
    except Exception:
        return ""


@functools.lru_cache(maxsize=None)
def _vmem_limit_bytes():
    """Generation-aware scoped-VMEM limit (leave headroom below physical)."""
    cap = 0
    try:
        cap = int(getattr(pltpu.get_tpu_info(), "vmem_capacity_bytes", 0))
    except Exception:
        cap = 0
    if cap <= 0:
        cap = (64 << 20) if "v7" in _device_kind() else (128 << 20)
    return min(110 << 20, int(cap * 0.8))


# ------------------------------------------------------------------ conv path

def _conv3x3_s2_kernel(ph_ref, w_ref, b_ref, o_ref, *, M8, Wo8):
    """3x3 / stride-2 conv for one batch image and one Cout tile.

    ph_ref: (6, 1, Hh*Wo8, Cp) bf16  tap slabs: q = 2*kw + rh,
                                     ph[q][h*Wo8 + w] = x_pad[2h+rh, 2w+kw, :]
    w_ref : (3, 3, Cp, tN)     bf16  (kh, kw, Cin, Cout-tile)
    b_ref : (1, tN)            f32   bias tile
    o_ref : (1, M8, tN)              output tile, M8 = Ho*Wo8 (lane-dense tN)
    """
    tN = o_ref.shape[-1]
    acc = jnp.zeros((M8, tN), jnp.float32)
    # 9 shifted matmuls, fully unrolled.  Every slab slice is a static,
    # sublane-tile-aligned, contiguous 2-D window — no in-kernel relayouts.
    for kh in range(3):
        ah, rh = divmod(kh, 2)              # kh = 2*ah + rh
        for kw in range(3):
            q = 2 * kw + rh
            slab = ph_ref[q, 0, ah * Wo8:ah * Wo8 + M8, :]       # (M8, Cp)
            acc = acc + jnp.dot(slab, w_ref[kh, kw],
                                preferred_element_type=jnp.float32)
    o_ref[0] = (acc + b_ref[...]).astype(o_ref.dtype)


def downsample_conv2d(x, w, b, padding=1):
    """x: (B, C, H, W) NCHW, w: (Cout, C, 3, 3) OIHW, b: (Cout,)."""
    B, C, H, W = x.shape
    Cout = w.shape[0]
    Ho = (H + 2 * padding - 3) // 2 + 1
    Wo = (W + 2 * padding - 3) // 2 + 1
    Hh = Ho + 1                              # per-slab H extent (covers ah=1)
    Wo8 = _round_up(Wo, 8)                   # sublane-aligned output width
    M8, Mh8 = Ho * Wo8, Hh * Wo8

    cdt = jnp.bfloat16                       # MXU-native inputs, f32 accumulation
    Cp = _round_up(C, 16)                    # bf16 packs 16 rows per sublane
    Np = _round_up(Cout, 128)                # lane-dense output channels

    kind = _device_kind()
    is_v5e = ("v5 lite" in kind) or ("v5e" in kind)
    tN = 128 if (is_v5e or Np % 256) else 256
    nN = Np // tN

    # --- tap slabs (one fused XLA pass; no im2col, no in-kernel relayout) ----
    x_nhwc = jnp.transpose(x, (0, 2, 3, 1)).astype(cdt)
    Hp, Wp = 2 * Hh, 2 * Wo8 + 2
    xp = jnp.pad(x_nhwc, ((0, 0),
                          (padding, Hp - H - padding),
                          (padding, Wp - W - padding),
                          (0, Cp - C)))
    ph = jnp.stack([xp[:, rh::2, kw::2, :][:, :Hh, :Wo8, :]
                    for kw in range(3) for rh in range(2)], axis=0)
    ph = ph.reshape(6, B, Mh8, Cp)           # flatten (Hh, Wo8) -> rows

    # Weights OIHW -> (kh, kw, Cin, Cout), zero-padded to (Cp, Np).
    wt = jnp.transpose(w, (2, 3, 1, 0)).astype(cdt)
    wt = jnp.pad(wt, ((0, 0), (0, 0), (0, Cp - C), (0, Np - Cout)))
    bias = jnp.pad(b.astype(jnp.float32), (0, Np - Cout)).reshape(1, Np)

    # Grid order: keep the *larger* operand resident.  batch innermost keeps
    # the weight tile resident across images (no per-batch weight re-DMA).
    ph_block_bytes = 6 * Mh8 * Cp * 2
    w_full_bytes = 9 * Cp * Np * 2
    batch_inner = B > 1 and w_full_bytes * (B - 1) > ph_block_bytes * B * (nN - 1)
    if batch_inner:
        grid = (nN, B)
        ph_spec = pl.BlockSpec((6, 1, Mh8, Cp), lambda n, bi: (0, bi, 0, 0))
        w_spec = pl.BlockSpec((3, 3, Cp, tN), lambda n, bi: (0, 0, 0, n))
        b_spec = pl.BlockSpec((1, tN), lambda n, bi: (0, n))
        o_spec = pl.BlockSpec((1, M8, tN), lambda n, bi: (bi, 0, n))
    else:
        grid = (B, nN)
        ph_spec = pl.BlockSpec((6, 1, Mh8, Cp), lambda bi, n: (0, bi, 0, 0))
        w_spec = pl.BlockSpec((3, 3, Cp, tN), lambda bi, n: (0, 0, 0, n))
        b_spec = pl.BlockSpec((1, tN), lambda bi, n: (0, n))
        o_spec = pl.BlockSpec((1, M8, tN), lambda bi, n: (bi, 0, n))

    out = pl.pallas_call(
        functools.partial(_conv3x3_s2_kernel, M8=M8, Wo8=Wo8),
        out_shape=jax.ShapeDtypeStruct((B, M8, Np), x.dtype),
        grid=grid,
        in_specs=[ph_spec, w_spec, b_spec],
        out_specs=o_spec,
        compiler_params=pltpu.CompilerParams(
            dimension_semantics=("parallel", "parallel"),
            vmem_limit_bytes=_vmem_limit_bytes()),
    )(ph, wt, bias)

    # Strip channel / width padding and return NCHW (PyTorch convention).
    out = out[:, :, :Cout].reshape(B, Ho, Wo8, Cout)[:, :, :Wo, :]
    # TODO(synk): return NHWC (and/or bf16) directly if the consumer allows —
    #             this transpose is an extra output-sized HBM pass.
    return jnp.transpose(out, (0, 3, 1, 2))


# --------------------------------------------------------------- avgpool path

def _avgpool_kernel(x_ref, p_ref, o_ref):
    # x_ref: (tR, G*2*W) input rows; p_ref: (G*2*W, G*Wo) bf16 block-diagonal
    # 0.25-pooling matrix; o_ref: (tR, G*Wo).  bf16 MXU, f32 accumulation.
    o_ref[...] = jnp.dot(x_ref[...].astype(jnp.bfloat16), p_ref[...],
                         preferred_element_type=jnp.float32).astype(o_ref.dtype)


def _pick_rows_tile(n, target):
    """Rows per block: whole array if small, else a multiple-of-8 divisor
    <= target, else a ragged multiple-of-8 tile (never one giant block)."""
    if n <= max(8, target):
        return n
    cap = max(8, target - target % 8)
    for d in range(cap, 7, -8):
        if n % d == 0:
            return d
    return cap


def downsample_avgpool2d(x):
    """x: (B, C, H, W) NCHW -> AvgPool2d(kernel=2, stride=2)."""
    B, C, H, W = x.shape
    Ho, Wo = H // 2, W // 2
    if H % 2 or W % 2:                      # PyTorch floor: drop last row/col
        x = x[:, :, :2 * Ho, :2 * Wo]
        H, W = 2 * Ho, 2 * Wo

    R = B * C * Ho                          # one GEMM row group per (b, c, ho)
    # Pack G output rows per GEMM row so the output last dim (G*Wo) is lane
    # dense (>= 128); pad with zero rows when no exact divisor exists.
    G_min = max(1, -(-128 // Wo))
    G = 0
    for g in range(G_min, 2 * G_min + 1):
        if g <= R and R % g == 0:
            G = g
            break
    if G == 0:
        G = G_min
    R_pad = -(-R // G) * G
    R2 = R_pad // G
    Lin, Lout = G * 2 * W, G * Wo

    xf = x.reshape(R, 2 * W)
    if R_pad != R:
        xf = jnp.pad(xf, ((0, R_pad - R), (0, 0)))
    xv = xf.reshape(R2, Lin)

    # Block-diagonal pooling matrix (0.25 is exact in bf16):
    # P[g*2W + r*W + w, g*Wo + wo] = 0.25 iff w//2 == wo.
    p_col = (jnp.arange(W)[:, None] // 2 == jnp.arange(Wo)[None, :])
    p_small = jnp.concatenate([p_col, p_col], axis=0).astype(jnp.float32) * 0.25
    pmat = jnp.kron(jnp.eye(G, dtype=jnp.float32), p_small).astype(jnp.bfloat16)

    # HBM-bound GEMM: big row tiles on v5e/v6e (128 MiB VMEM), smaller on v7x;
    # cap so double-buffered in/out blocks stay inside the VMEM budget.
    target = 512 if "v7" in _device_kind() else 1024
    itemsize = x.dtype.itemsize
    row_bytes = 2 * (Lin + Lout) * itemsize
    budget = max(1 << 20, _vmem_limit_bytes() - 4 * Lin * Lout - (4 << 20))
    target = max(8, min(target, (budget // row_bytes) // 8 * 8))
    tR = _pick_rows_tile(R2, target)

    out = pl.pallas_call(
        _avgpool_kernel,
        out_shape=jax.ShapeDtypeStruct((R2, Lout), x.dtype),
        grid=(pl.cdiv(R2, tR),),
        in_specs=[
            pl.BlockSpec((tR, Lin), lambda i: (i, 0)),
            pl.BlockSpec((Lin, Lout), lambda i: (0, 0)),
        ],
        out_specs=pl.BlockSpec((tR, Lout), lambda i: (i, 0)),
        compiler_params=pltpu.CompilerParams(
            dimension_semantics=("parallel",),
            vmem_limit_bytes=_vmem_limit_bytes()),
    )(xv, pmat)
    return out.reshape(R_pad, Wo)[:R].reshape(B, C, Ho, Wo)


# ----------------------------------------------------------------- dispatcher

def downsample(x, *, use_conv, w=None, b=None, padding=1):
    """Forward pass of Downsample (dims=2). NCHW in, NCHW out."""
    if use_conv:
        return downsample_conv2d(x, w, b, padding=padding)
    return downsample_avgpool2d(x)


# ---------------------------------------------------------- demo / correctness

if __name__ == "__main__":
    key = jax.random.PRNGKey(0)
    kx, kw_, kb = jax.random.split(key, 3)

    B, C, H, W = 2, 4, 16, 16
    Cout = C                                # out_channels defaults to channels
    x = jax.random.normal(kx, (B, C, H, W), dtype=jnp.float32)

    # PyTorch default Conv2d init: U(-1/sqrt(fan_in), 1/sqrt(fan_in)).
    fan_in = C * 3 * 3
    bound = 1.0 / (fan_in ** 0.5)
    w = jax.random.uniform(kw_, (Cout, C, 3, 3), jnp.float32, -bound, bound)
    b = jax.random.uniform(kb, (Cout,), jnp.float32, -bound, bound)

    conv_fn = jax.jit(lambda xx, ww, bb: downsample(xx, use_conv=True, w=ww, b=bb))
    pool_fn = jax.jit(lambda xx: downsample(xx, use_conv=False))

    # use_conv=True path (bf16 MXU inputs, f32 accumulation) vs. an identically
    # quantized lax.conv reference (same bf16 products, f32 accumulation).
    y_conv = jax.block_until_ready(conv_fn(x, w, b))
    ref = jax.lax.conv_general_dilated(
        x.astype(jnp.bfloat16), w.astype(jnp.bfloat16),
        window_strides=(2, 2), padding=((1, 1), (1, 1)),
        dimension_numbers=("NCHW", "OIHW", "NCHW"),
        preferred_element_type=jnp.float32,
    ).astype(jnp.float32) + b.reshape(1, Cout, 1, 1)
    assert y_conv.shape == (B, Cout, H // 2, W // 2)
    assert jnp.allclose(y_conv, ref, atol=1e-3, rtol=1e-3)

    # use_conv=False path (AvgPool2d(2, 2)); tolerance covers the bf16 input
    # rounding of the pooling GEMM (an indexing bug would be O(1)).
    y_pool = jax.block_until_ready(pool_fn(x))
    ref_pool = x.reshape(B, C, H // 2, 2, W // 2, 2).mean(axis=(3, 5))
    assert y_pool.shape == (B, C, H // 2, W // 2)
    assert jnp.allclose(y_pool, ref_pool, atol=2e-2, rtol=2e-2)

    print("KERNEL_OK")
</pallas_src>

<mosaic_0001>
module attributes {stable_mosaic.version = 11 : i64} {
  func.func @_conv3x3_s2_kernel(%arg0: i32, %arg1: i32, %arg2: memref<6x1x72x16xbf16, #tpu.memory_space<vmem>>, %arg3: memref<3x3x16x128xbf16, #tpu.memory_space<vmem>>, %arg4: memref<1x128xf32, #tpu.memory_space<vmem>>, %arg5: memref<1x64x128xf32, #tpu.memory_space<vmem>>) attributes {dimension_semantics = [#tpu.dimension_semantics<parallel>, #tpu.dimension_semantics<parallel>], iteration_bounds = array<i64: 1, 2>, scalar_prefetch = 0 : i64, scratch_operands = 0 : i64, tpu.core_type = #tpu.core_type<tc>, window_params = [{transform_indices = @transform_0, window_bounds = array<i64: 6, 1, 72, 16>}, {transform_indices = @transform_1, window_bounds = array<i64: 3, 3, 16, 128>}, {transform_indices = @transform_2, window_bounds = array<i64: 1, 128>}, {transform_indices = @transform_3, window_bounds = array<i64: 1, 64, 128>}]} {
    %cst = arith.constant 0.000000e+00 : f32
    %0 = vector.broadcast %cst : f32 to vector<64x128xf32>
    %c0 = arith.constant 0 : index
    %c0_0 = arith.constant 0 : index
    %c0_1 = arith.constant 0 : index
    %c0_2 = arith.constant 0 : index
    %1 = vector.load %arg2[%c0, %c0_0, %c0_1, %c0_2] : memref<6x1x72x16xbf16, #tpu.memory_space<vmem>>, vector<1x1x64x16xbf16>
    %2 = vector.shape_cast %1 : vector<1x1x64x16xbf16> to vector<64x16xbf16>
    %c0_3 = arith.constant 0 : index
    %c0_4 = arith.constant 0 : index
    %c0_5 = arith.constant 0 : index
    %c0_6 = arith.constant 0 : index
    %3 = vector.load %arg3[%c0_3, %c0_4, %c0_5, %c0_6] : memref<3x3x16x128xbf16, #tpu.memory_space<vmem>>, vector<1x1x16x128xbf16>
    %4 = vector.shape_cast %3 : vector<1x1x16x128xbf16> to vector<16x128xbf16>
    %cst_7 = arith.constant dense<0.000000e+00> : vector<64x128xf32>
    %5 = tpu.matmul %2, %4, %cst_7 {dimension_numbers = #tpu.dot_dimension_numbers<[1], [0], [0], [1], [0, 0, 1, 1], [], []>} : vector<64x16xbf16>, vector<16x128xbf16>, vector<64x128xf32> -> vector<64x128xf32>
    %6 = arith.addf %0, %5 : vector<64x128xf32>
    %c2 = arith.constant 2 : index
    %c0_8 = arith.constant 0 : index
    %c0_9 = arith.constant 0 : index
    %c0_10 = arith.constant 0 : index
    %7 = vector.load %arg2[%c2, %c0_8, %c0_9, %c0_10] : memref<6x1x72x16xbf16, #tpu.memory_space<vmem>>, vector<1x1x64x16xbf16>
    %8 = vector.shape_cast %7 : vector<1x1x64x16xbf16> to vector<64x16xbf16>
    %c0_11 = arith.constant 0 : index
    %c1 = arith.constant 1 : index
    %c0_12 = arith.constant 0 : index
    %c0_13 = arith.constant 0 : index
    %9 = vector.load %arg3[%c0_11, %c1, %c0_12, %c0_13] : memref<3x3x16x128xbf16, #tpu.memory_space<vmem>>, vector<1x1x16x128xbf16>
    %10 = vector.shape_cast %9 : vector<1x1x16x128xbf16> to vector<16x128xbf16>
    %cst_14 = arith.constant dense<0.000000e+00> : vector<64x128xf32>
    %11 = tpu.matmul %8, %10, %cst_14 {dimension_numbers = #tpu.dot_dimension_numbers<[1], [0], [0], [1], [0, 0, 1, 1], [], []>} : vector<64x16xbf16>, vector<16x128xbf16>, vector<64x128xf32> -> vector<64x128xf32>
    %12 = arith.addf %6, %11 : vector<64x128xf32>
    %c4 = arith.constant 4 : index
    %c0_15 = arith.constant 0 : index
    %c0_16 = arith.constant 0 : index
    %c0_17 = arith.constant 0 : index
    %13 = vector.load %arg2[%c4, %c0_15, %c0_16, %c0_17] : memref<6x1x72x16xbf16, #tpu.memory_space<vmem>>, vector<1x1x64x16xbf16>
    %14 = vector.shape_cast %13 : vector<1x1x64x16xbf16> to vector<64x16xbf16>
    %c0_18 = arith.constant 0 : index
    %c2_19 = arith.constant 2 : index
    %c0_20 = arith.constant 0 : index
    %c0_21 = arith.constant 0 : index
    %15 = vector.load %arg3[%c0_18, %c2_19, %c0_20, %c0_21] : memref<3x3x16x128xbf16, #tpu.memory_space<vmem>>, vector<1x1x16x128xbf16>
    %16 = vector.shape_cast %15 : vector<1x1x16x128xbf16> to vector<16x128xbf16>
    %cst_22 = arith.constant dense<0.000000e+00> : vector<64x128xf32>
    %17 = tpu.matmul %14, %16, %cst_22 {dimension_numbers = #tpu.dot_dimension_numbers<[1], [0], [0], [1], [0, 0, 1, 1], [], []>} : vector<64x16xbf16>, vector<16x128xbf16>, vector<64x128xf32> -> vector<64x128xf32>
    %18 = arith.addf %12, %17 : vector<64x128xf32>
    %c1_23 = arith.constant 1 : index
    %c0_24 = arith.constant 0 : index
    %c0_25 = arith.constant 0 : index
    %c0_26 = arith.constant 0 : index
    %19 = vector.load %arg2[%c1_23, %c0_24, %c0_25, %c0_26] : memref<6x1x72x16xbf16, #tpu.memory_space<vmem>>, vector<1x1x64x16xbf16>
    %20 = vector.shape_cast %19 : vector<1x1x64x16xbf16> to vector<64x16xbf16>
    %c1_27 = arith.constant 1 : index
    %c0_28 = arith.constant 0 : index
    %c0_29 = arith.constant 0 : index
    %c0_30 = arith.constant 0 : index
    %21 = vector.load %arg3[%c1_27, %c0_28, %c0_29, %c0_30] : memref<3x3x16x128xbf16, #tpu.memory_space<vmem>>, vector<1x1x16x128xbf16>
    %22 = vector.shape_cast %21 : vector<1x1x16x128xbf16> to vector<16x128xbf16>
    %cst_31 = arith.constant dense<0.000000e+00> : vector<64x128xf32>
    %23 = tpu.matmul %20, %22, %cst_31 {dimension_numbers = #tpu.dot_dimension_numbers<[1], [0], [0], [1], [0, 0, 1, 1], [], []>} : vector<64x16xbf16>, vector<16x128xbf16>, vector<64x128xf32> -> vector<64x128xf32>
    %24 = arith.addf %18, %23 : vector<64x128xf32>
    %c3 = arith.constant 3 : index
    %c0_32 = arith.constant 0 : index
    %c0_33 = arith.constant 0 : index
    %c0_34 = arith.constant 0 : index
    %25 = vector.load %arg2[%c3, %c0_32, %c0_33, %c0_34] : memref<6x1x72x16xbf16, #tpu.memory_space<vmem>>, vector<1x1x64x16xbf16>
    %26 = vector.shape_cast %25 : vector<1x1x64x16xbf16> to vector<64x16xbf16>
    %c1_35 = arith.constant 1 : index
    %c1_36 = arith.constant 1 : index
    %c0_37 = arith.constant 0 : index
    %c0_38 = arith.constant 0 : index
    %27 = vector.load %arg3[%c1_35, %c1_36, %c0_37, %c0_38] : memref<3x3x16x128xbf16, #tpu.memory_space<vmem>>, vector<1x1x16x128xbf16>
    %28 = vector.shape_cast %27 : vector<1x1x16x128xbf16> to vector<16x128xbf16>
    %cst_39 = arith.constant dense<0.000000e+00> : vector<64x128xf32>
    %29 = tpu.matmul %26, %28, %cst_39 {dimension_numbers = #tpu.dot_dimension_numbers<[1], [0], [0], [1], [0, 0, 1, 1], [], []>} : vector<64x16xbf16>, vector<16x128xbf16>, vector<64x128xf32> -> vector<64x128xf32>
    %30 = arith.addf %24, %29 : vector<64x128xf32>
    %c5 = arith.constant 5 : index
    %c0_40 = arith.constant 0 : index
    %c0_41 = arith.constant 0 : index
    %c0_42 = arith.constant 0 : index
    %31 = vector.load %arg2[%c5, %c0_40, %c0_41, %c0_42] : memref<6x1x72x16xbf16, #tpu.memory_space<vmem>>, vector<1x1x64x16xbf16>
    %32 = vector.shape_cast %31 : vector<1x1x64x16xbf16> to vector<64x16xbf16>
    %c1_43 = arith.constant 1 : index
    %c2_44 = arith.constant 2 : index
    %c0_45 = arith.constant 0 : index
    %c0_46 = arith.constant 0 : index
    %33 = vector.load %arg3[%c1_43, %c2_44, %c0_45, %c0_46] : memref<3x3x16x128xbf16, #tpu.memory_space<vmem>>, vector<1x1x16x128xbf16>
    %34 = vector.shape_cast %33 : vector<1x1x16x128xbf16> to vector<16x128xbf16>
    %cst_47 = arith.constant dense<0.000000e+00> : vector<64x128xf32>
    %35 = tpu.matmul %32, %34, %cst_47 {dimension_numbers = #tpu.dot_dimension_numbers<[1], [0], [0], [1], [0, 0, 1, 1], [], []>} : vector<64x16xbf16>, vector<16x128xbf16>, vector<64x128xf32> -> vector<64x128xf32>
    %36 = arith.addf %30, %35 : vector<64x128xf32>
    %c0_48 = arith.constant 0 : index
    %c0_49 = arith.constant 0 : index
    %c8 = arith.constant 8 : index
    %c0_50 = arith.constant 0 : index
    %37 = vector.load %arg2[%c0_48, %c0_49, %c8, %c0_50] : memref<6x1x72x16xbf16, #tpu.memory_space<vmem>>, vector<1x1x64x16xbf16>
    %38 = vector.shape_cast %37 : vector<1x1x64x16xbf16> to vector<64x16xbf16>
    %c2_51 = arith.constant 2 : index
    %c0_52 = arith.constant 0 : index
    %c0_53 = arith.constant 0 : index
    %c0_54 = arith.constant 0 : index
    %39 = vector.load %arg3[%c2_51, %c0_52, %c0_53, %c0_54] : memref<3x3x16x128xbf16, #tpu.memory_space<vmem>>, vector<1x1x16x128xbf16>
    %40 = vector.shape_cast %39 : vector<1x1x16x128xbf16> to vector<16x128xbf16>
    %cst_55 = arith.constant dense<0.000000e+00> : vector<64x128xf32>
    %41 = tpu.matmul %38, %40, %cst_55 {dimension_numbers = #tpu.dot_dimension_numbers<[1], [0], [0], [1], [0, 0, 1, 1], [], []>} : vector<64x16xbf16>, vector<16x128xbf16>, vector<64x128xf32> -> vector<64x128xf32>
    %42 = arith.addf %36, %41 : vector<64x128xf32>
    %c2_56 = arith.constant 2 : index
    %c0_57 = arith.constant 0 : index
    %c8_58 = arith.constant 8 : index
    %c0_59 = arith.constant 0 : index
    %43 = vector.load %arg2[%c2_56, %c0_57, %c8_58, %c0_59] : memref<6x1x72x16xbf16, #tpu.memory_space<vmem>>, vector<1x1x64x16xbf16>
    %44 = vector.shape_cast %43 : vector<1x1x64x16xbf16> to vector<64x16xbf16>
    %c2_60 = arith.constant 2 : index
    %c1_61 = arith.constant 1 : index
    %c0_62 = arith.constant 0 : index
    %c0_63 = arith.constant 0 : index
    %45 = vector.load %arg3[%c2_60, %c1_61, %c0_62, %c0_63] : memref<3x3x16x128xbf16, #tpu.memory_space<vmem>>, vector<1x1x16x128xbf16>
    %46 = vector.shape_cast %45 : vector<1x1x16x128xbf16> to vector<16x128xbf16>
    %cst_64 = arith.constant dense<0.000000e+00> : vector<64x128xf32>
    %47 = tpu.matmul %44, %46, %cst_64 {dimension_numbers = #tpu.dot_dimension_numbers<[1], [0], [0], [1], [0, 0, 1, 1], [], []>} : vector<64x16xbf16>, vector<16x128xbf16>, vector<64x128xf32> -> vector<64x128xf32>
    %48 = arith.addf %42, %47 : vector<64x128xf32>
    %c4_65 = arith.constant 4 : index
    %c0_66 = arith.constant 0 : index
    %c8_67 = arith.constant 8 : index
    %c0_68 = arith.constant 0 : index
    %49 = vector.load %arg2[%c4_65, %c0_66, %c8_67, %c0_68] : memref<6x1x72x16xbf16, #tpu.memory_space<vmem>>, vector<1x1x64x16xbf16>
    %50 = vector.shape_cast %49 : vector<1x1x64x16xbf16> to vector<64x16xbf16>
    %c2_69 = arith.constant 2 : index
    %c2_70 = arith.constant 2 : index
    %c0_71 = arith.constant 0 : index
    %c0_72 = arith.constant 0 : index
    %51 = vector.load %arg3[%c2_69, %c2_70, %c0_71, %c0_72] : memref<3x3x16x128xbf16, #tpu.memory_space<vmem>>, vector<1x1x16x128xbf16>
    %52 = vector.shape_cast %51 : vector<1x1x16x128xbf16> to vector<16x128xbf16>
    %cst_73 = arith.constant dense<0.000000e+00> : vector<64x128xf32>
    %53 = tpu.matmul %50, %52, %cst_73 {dimension_numbers = #tpu.dot_dimension_numbers<[1], [0], [0], [1], [0, 0, 1, 1], [], []>} : vector<64x16xbf16>, vector<16x128xbf16>, vector<64x128xf32> -> vector<64x128xf32>
    %54 = arith.addf %48, %53 : vector<64x128xf32>
    %c0_74 = arith.constant 0 : index
    %c0_75 = arith.constant 0 : index
    %55 = vector.load %arg4[%c0_74, %c0_75] : memref<1x128xf32, #tpu.memory_space<vmem>>, vector<1x128xf32>
    %56 = vector.broadcast %55 : vector<1x128xf32> to vector<64x128xf32>
    %57 = arith.addf %54, %56 : vector<64x128xf32>
    %c0_76 = arith.constant 0 : index
    %c0_77 = arith.constant 0 : index
    %c0_78 = arith.constant 0 : index
    %58 = vector.load %arg5[%c0_76, %c0_77, %c0_78] : memref<1x64x128xf32, #tpu.memory_space<vmem>>, vector<1x64x128xf32>
    %59 = vector.shape_cast %58 : vector<1x64x128xf32> to vector<64x128xf32>
    %60 = vector.shape_cast %57 : vector<64x128xf32> to vector<1x64x128xf32>
    tpu.vector_store %arg5[%c0_76, %c0_77, %c0_78], %60 {strides = array<i32>} : memref<1x64x128xf32, #tpu.memory_space<vmem>>, vector<1x64x128xf32>,
    return
  }
  func.func @transform_0(%arg0: i32, %arg1: i32) -> (i32, i32, i32, i32) {
    %c0_i32 = arith.constant 0 : i32
    %c0_i32_0 = arith.constant 0 : i32
    %c0_i32_1 = arith.constant 0 : i32
    %c0_i32_2 = arith.constant 0 : i32
    return %c0_i32, %arg1, %c0_i32_0, %c0_i32_1 : i32, i32, i32, i32
  }
  func.func @transform_1(%arg0: i32, %arg1: i32) -> (i32, i32, i32, i32) {
    %c0_i32 = arith.constant 0 : i32
    %c0_i32_0 = arith.constant 0 : i32
    %c0_i32_1 = arith.constant 0 : i32
    %c0_i32_2 = arith.constant 0 : i32
    return %c0_i32, %c0_i32_0, %c0_i32_1, %arg0 : i32, i32, i32, i32
  }
  func.func @transform_2(%arg0: i32, %arg1: i32) -> (i32, i32) {
    %c0_i32 = arith.constant 0 : i32
    %c0_i32_0 = arith.constant 0 : i32
    return %c0_i32, %arg0 : i32, i32
  }
  func.func @transform_3(%arg0: i32, %arg1: i32) -> (i32, i32, i32) {
    %c0_i32 = arith.constant 0 : i32
    %c0_i32_0 = arith.constant 0 : i32
    return %arg1, %c0_i32, %arg0 : i32, i32, i32
  }
}

</mosaic_0001>

<bundles_post_ra>
// kernel: _lambda_.1
= control target key start
LH: loop header
LB: loop body
LE: loop exit
PB: predicated region body
PF: predicated region fallthrough
CT: control target
= control target key end

     0   :  { %s2152_s12 = smov 0   ;;  %s2154_s13 = smov 0   ;;  %s2416_s0 = inlined_call_operand.vmem [shape: bf16[6,2,72,16], index: 0, kind: input, shape index: {}]   ;;  %s2417_s1 = inlined_call_operand.vmem [shape: bf16[3,3,16,128], index: 1, kind: input, shape index: {}]   ;;  %s2418_s2 = inlined_call_operand.vmem [shape: f32[1,128], index: 2, kind: input, shape index: {}]   ;;  %s2419_s3 = inlined_call_operand.vmem [shape: f32[2,64,128], index: 3, kind: output, shape index: {}]  }
   0x1   :  { %s2156_s14 = smov 0   ;;  %s2158_s15 = smov 0  }
   0x2   :  { %s2160_s16 = smov 0  }
   0x3 LB: > { %s22_s17 = sadd.s32 1, %s2126_s15  ;;  %p39_p1 = scmp.ne.s32.totalorder %s2118_s13, %s2114_s12  ;;  %s2130_s16 = sphi %s2160_s16, %s13_s16   ;;  %s2126_s15 = sphi %s2158_s15, %s2423_s15   ;;  %s2122_s14 = sphi %s2156_s14, %s2422_s14   ;;  %s2118_s13 = sphi %s2154_s13, %s2421_s13   ;;  %s2114_s12 = sphi %s2152_s12, %s2420_s12  }
   0x4   : > { %p23_p0 = scmp.ge.s32.totalorder %s22_s17, 2  ;;  %p40_p2 = scmp.eq.s32.totalorder %s2130_s16, 0 }
   0x5   : > { %s32_s19 = sadd.s32 1, %s2118_s13  ;;  %p1705_p5 = scmp.ge.s32.totalorder %s2130_s16, 2 }
   0x6   : > { %s2425_s17 = smov (%p23_p0, %s22_s17), 0  ;;  %p41_p3 = por %p40_p2, %p39_p1 }
   0x7   : > { %s29_s18 = ssub.s32 %s2126_s15, %s2425_s17  ;;  %158 = sbr.rel (%p1705_p5) target bundleno = 32 (0x20), region = 24 }
   0x8   : > { %p30_p4 = scmp.eq.s32.totalorder %s29_s18, 0 }
   0xa   : > { %s2187_s20 = scalar_select %p30_p4, %s2118_s13, %s32_s19  }
   0xc   : > { %161 = sbr.rel (!%p41_p3) target bundleno = 32 (0x20), region = 28  ;;  %s163_s21 = sand.u32 (%p41_p3), 1, %s2118_s13  }
   0xd   : > { %s2005_s22 = smul.u32 (%p41_p3), 36, %s2126_s15 }
   0xe   : > { %s2004_s23 = smul.u32 (%p41_p3), 216, %s163_s21 }
   0xf   : > { %s2195_s26 = scalar_lea.vmem (%p41_p3), %s2416_s0, %s2005_s22 }
  0x10   : > { %v185_v0 = vld [vmem:[%s2195_s26] sm:$0xff] (%p41_p3)   ;;  %v189_v1 = vld [vmem:[%s2195_s26 + $0x8] sm:$0xff] (%p41_p3)   ;;  %v193_v2 = vld [vmem:[%s2195_s26 + $0x10] sm:$0xff] (%p41_p3)   ;;  %s2200_s27 = scalar_lea.vmem (%p41_p3), [#allocation2], %s2004_s23 }
  0x11   : > { %186 = vst [vmem:[%s2200_s27] sm:$0xff] %v185_v0   ;;  %190 = vst [vmem:[%s2200_s27 + $0x8] sm:$0xff] %v189_v1   ;;  %v197_v3 = vld [vmem:[%s2195_s26 + $0x18] sm:$0xff]   ;;  %v201_v4 = vld [vmem:[%s2195_s26 + $0x20] sm:$0xf] }
  0x12   : > { %194 = vst [vmem:[%s2200_s27 + $0x10] sm:$0xff] %v193_v2   ;;  %v203_v5 = vld [vmem:[%s2195_s26 + $0x48] sm:$0xff]   ;;  %198 = vst [vmem:[%s2200_s27 + $0x18] sm:$0xff] %v197_v3   ;;  %v207_v6 = vld [vmem:[%s2195_s26 + $0x50] sm:$0xff]  }
  0x13   : > { %202 = vst [vmem:[%s2200_s27 + $0x20] sm:$0xf] %v201_v4  ;;  %204 = vst [vmem:[%s2200_s27 + $0x24] sm:$0xff] %v203_v5   ;;  %v211_v7 = vld [vmem:[%s2195_s26 + $0x58] sm:$0xff]   ;;  %v215_v8 = vld [vmem:[%s2195_s26 + $0x60] sm:$0xff]  }
  0x14   : > { %208 = vst [vmem:[%s2200_s27 + $0x2c] sm:$0xff] %v207_v6   ;;  %212 = vst [vmem:[%s2200_s27 + $0x34] sm:$0xff] %v211_v7   ;;  %v219_v9 = vld [vmem:[%s2195_s26 + $0x68] sm:$0xf]  ;;  %v221_v10 = vld [vmem:[%s2195_s26 + $0x90] sm:$0xff]  }
  0x15   : > { %216 = vst [vmem:[%s2200_s27 + $0x3c] sm:$0xff] %v215_v8   ;;  %v225_v11 = vld [vmem:[%s2195_s26 + $0x98] sm:$0xff]   ;;  %220 = vst [vmem:[%s2200_s27 + $0x44] sm:$0xf] %v219_v9  ;;  %v229_v12 = vld [vmem:[%s2195_s26 + $0xa0] sm:$0xff]  }
  0x16   : > { %222 = vst [vmem:[%s2200_s27 + $0x48] sm:$0xff] %v221_v10   ;;  %226 = vst [vmem:[%s2200_s27 + $0x50] sm:$0xff] %v225_v11   ;;  %v233_v13 = vld [vmem:[%s2195_s26 + $0xa8] sm:$0xff]   ;;  %v237_v14 = vld [vmem:[%s2195_s26 + $0xb0] sm:$0xf] }
  0x17   : > { %230 = vst [vmem:[%s2200_s27 + $0x58] sm:$0xff] %v229_v12   ;;  %234 = vst [vmem:[%s2200_s27 + $0x60] sm:$0xff] %v233_v13   ;;  %v239_v15 = vld [vmem:[%s2195_s26 + $0xd8] sm:$0xff]   ;;  %v243_v16 = vld [vmem:[%s2195_s26 + $0xe0] sm:$0xff]  }
  0x18   : > { %238 = vst [vmem:[%s2200_s27 + $0x68] sm:$0xf] %v237_v14  ;;  %v247_v17 = vld [vmem:[%s2195_s26 + $0xe8] sm:$0xff]   ;;  %240 = vst [vmem:[%s2200_s27 + $0x6c] sm:$0xff] %v239_v15   ;;  %v251_v18 = vld [vmem:[%s2195_s26 + $0xf0] sm:$0xff]  }
  0x19   : > { %244 = vst [vmem:[%s2200_s27 + $0x74] sm:$0xff] %v243_v16   ;;  %248 = vst [vmem:[%s2200_s27 + $0x7c] sm:$0xff] %v247_v17   ;;  %v255_v19 = vld [vmem:[%s2195_s26 + $0xf8] sm:$0xf]  ;;  %v257_v20 = vld [vmem:[%s2195_s26 + $0x120] sm:$0xff]  }
  0x1a   : > { %252 = vst [vmem:[%s2200_s27 + $0x84] sm:$0xff] %v251_v18   ;;  %256 = vst [vmem:[%s2200_s27 + $0x8c] sm:$0xf] %v255_v19  ;;  %v261_v21 = vld [vmem:[%s2195_s26 + $0x128] sm:$0xff]   ;;  %v265_v22 = vld [vmem:[%s2195_s26 + $0x130] sm:$0xff]  }
  0x1b   : > { %258 = vst [vmem:[%s2200_s27 + $0x90] sm:$0xff] %v257_v20   ;;  %v269_v23 = vld [vmem:[%s2195_s26 + $0x138] sm:$0xff]   ;;  %262 = vst [vmem:[%s2200_s27 + $0x98] sm:$0xff] %v261_v21   ;;  %v273_v24 = vld [vmem:[%s2195_s26 + $0x140] sm:$0xf] }
  0x1c   : > { %266 = vst [vmem:[%s2200_s27 + $0xa0] sm:$0xff] %v265_v22   ;;  %270 = vst [vmem:[%s2200_s27 + $0xa8] sm:$0xff] %v269_v23   ;;  %v275_v25 = vld [vmem:[%s2195_s26 + $0x168] sm:$0xff]   ;;  %v279_v26 = vld [vmem:[%s2195_s26 + $0x170] sm:$0xff]  }
  0x1d   : > { %274 = vst [vmem:[%s2200_s27 + $0xb0] sm:$0xf] %v273_v24  ;;  %276 = vst [vmem:[%s2200_s27 + $0xb4] sm:$0xff] %v275_v25   ;;  %v283_v27 = vld [vmem:[%s2195_s26 + $0x178] sm:$0xff]   ;;  %v287_v28 = vld [vmem:[%s2195_s26 + $0x180] sm:$0xff]  }
  0x1e   : > { %280 = vst [vmem:[%s2200_s27 + $0xbc] sm:$0xff] %v279_v26   ;;  %v291_v29 = vld [vmem:[%s2195_s26 + $0x188] sm:$0xf]  ;;  %284 = vst [vmem:[%s2200_s27 + $0xc4] sm:$0xff] %v283_v27  }
  0x1f   : > { %288 = vst [vmem:[%s2200_s27 + $0xcc] sm:$0xff] %v287_v28   ;;  %292 = vst [vmem:[%s2200_s27 + $0xd4] sm:$0xf] %v291_v29 }
  0x20 PF: > { %p1707_p6 = scmp.ge.s32.totalorder %s2130_s16, 1  ;;  %p423_p7 = scmp.lt.s32.totalorder %s2130_s16, 3 }
  0x22   : > { %p424_p8 = pnand %p1707_p6, %p423_p7 }
  0x23   : > { %s430_s30 = sand.u32 (!%p424_p8), 1, %s2114_s12   ;;  %p470_p9 = scmp.lt.s32.totalorder (!%p424_p8), %s2122_s14, 1 }
  0x24   : > { %427 = sbr.rel (%p424_p8) target bundleno = 316 (0x13c), region = 69 }
  0x25   : > { %s2006_s4 = smul.u32 (!%p424_p8), 216, %s430_s30 }
  0x27   : > { %s2271_s9 = scalar_lea.vmem (!%p424_p8), [#allocation2], %s2006_s4 }
  0x29   : > { %v2047_v30 = vld [vmem:[%s2417_s1 + $0x8] sm:$0xff]   ;;  %vm527_vm0 = vcmask 130048   ;;  %v2050_v31 = vld [vmem:[%s2417_s1] sm:$0xff]   ;;  %v2053_v32 = vld [vmem:[%s2417_s1 + $0x10] sm:$0xff]   ;;  %s2427_s14 = smov (!%p470_p9, %s2122_s14), 1 }
  0x2a   : > { %2002 = vmatprep.subr.bf16.mxu1 %v2047_v30  ;;  %1912 = vmatprep.subr.bf16.mxu0 %v2047_v30  ;;  %v2048_v33 = vld [vmem:[%s2271_s9 + $0x48] sm:$0xff]   ;;  %v2049_v34 = vld [vmem:[%s2271_s9 + $0x58] sm:$0xff]   ;;  %v2051_v35 = vld [vmem:[%s2271_s9 + $0x50] sm:$0xff]   ;;  %s1866_s28 = sshll.u32 %s2427_s14, 6 }
  0x2b   : > { %2003 = vmatpush3.bf16.msra.mxu1 %v2047_v30  ;;  %1913 = vmatpush3.bf16.msra.mxu0 %v2047_v30  ;;  %v2052_v36 = vld [vmem:[%s2271_s9 + $0x60] sm:$0xff]   ;;  %v2055_v38 = vld [vmem:[%s2271_s9 + $0x90] sm:$0xff]   ;;  %v2057_v40 = vld [vmem:[%s2271_s9 + $0x8] sm:$0xff]   ;;  %s2390_s14 = scalar_lea.vmem %s2419_s3, %s1866_s28 }
  0x2c   : > { %1922 = vmatprep.subr.bf16.mxu1 %v2050_v31  ;;  %1932 = vmatprep.subr.bf16.mxu0 %v2053_v32  ;;  %v2054_v37 = vld [vmem:[%s2271_s9] sm:$0xff]   ;;  %v2058_v41 = vld [vmem:[%s2271_s9 + $0x98] sm:$0xff]   ;;  %v2060_v43 = vld [vmem:[%s2271_s9 + $0x10] sm:$0xff]  }
  0x2d   : > { %1914 = vmatprep.mubr.msk.bf16.mxu0 %vm527_vm0, %v2048_v33  ;;  %1918 = vmatprep.mubr.msk.bf16.mxu1 %vm527_vm0, %v2049_v34  ;;  %v2056_v39 = vld [vmem:[%s2417_s1 + $0x18] sm:$0xff]   ;;  %v2059_v42 = vld [vmem:[%s2417_s1 + $0x20] sm:$0xff]   ;;  %v2066_v47 = vld [vmem:[%s2417_s1 + $0x28] sm:$0xff]  }
  0x2e   : > { %1915 = vmatmul.mubr.msk.bf16.vlgmr.msra.gmra.mxu0 %vm527_vm0, %v2051_v35  ;;  %1919 = vmatmul.mubr.msk.bf16.vlgmr.msra.gmra.mxu1 %vm527_vm0, %v2052_v36  ;;  %v2061_v44 = vld [vmem:[%s2271_s9 + $0xa0] sm:$0xff]   ;;  %v2062_v45 = vld [vmem:[%s2271_s9 + $0x18] sm:$0xff]   ;;  %v2063_v46 = vld [vmem:[%s2271_s9 + $0xa8] sm:$0xff]  }
  0x2f   : > { %1933 = vmatpush3.bf16.msra.mxu0 %v2053_v32  ;;  %1923 = vmatpush3.bf16.msra.mxu1 %v2050_v31  ;;  %v2065_v48 = vld [vmem:[%s2271_s9 + $0x6c] sm:$0xff]   ;;  %v2064_v49 = vld [vmem:[%s2271_s9 + $0x24] sm:$0xff]   ;;  %v2068_v52 = vld [vmem:[%s2271_s9 + $0x74] sm:$0xff]  }
  0x30   : > { %1924 = vmatprep.mubr.msk.bf16.mxu1 %vm527_vm0, %v2054_v37  ;;  %1934 = vmatprep.mubr.msk.bf16.mxu0 %vm527_vm0, %v2055_v38  ;;  %v2069_v50 = vld [vmem:[%s2417_s1 + $0x30] sm:$0xff]   ;;  %v2076_v55 = vld [vmem:[%s2417_s1 + $0x38] sm:$0xff]   ;;  %v2079_v56 = vld [vmem:[%s2417_s1 + $0x40] sm:$0xff]  }
  0x31   : > { %1942 = vmatprep.subr.bf16.mxu1 %v2056_v39  ;;  %1952 = vmatprep.subr.bf16.mxu0 %v2059_v42  ;;  %v2067_v51 = vld [vmem:[%s2271_s9 + $0x2c] sm:$0xff]   ;;  %v2070_v53 = vld [vmem:[%s2271_s9 + $0x34] sm:$0xff]   ;;  %v2071_v54 = vld [vmem:[%s2271_s9 + $0x7c] sm:$0xff]  }
  0x32   : > { %v2072_v57 = vld [vmem:[%s2271_s9 + $0x3c] sm:$0xff]   ;;  %v2073_v58 = vld [vmem:[%s2271_s9 + $0x84] sm:$0xff]   ;;  %v2074_v60 = vld [vmem:[%s2271_s9 + $0xb4] sm:$0xff]  }
  0x33   : > { %v2075_v59 = vld [vmem:[%s2271_s9 + $0x4] sm:$0xff]   ;;  %v2078_v61 = vld [vmem:[%s2271_s9 + $0xc] sm:$0xff]   ;;  %v2077_v62 = vld [vmem:[%s2271_s9 + $0xbc] sm:$0xff]  }
  0x34   : > { %v2080_v63 = vld [vmem:[%s2271_s9 + $0xc4] sm:$0xff]   ;;  %v2081_v0 = vld [vmem:[%s2271_s9 + $0x14] sm:$0xff]   ;;  %v2083_v1 = vld [vmem:[%s2271_s9 + $0x1c] sm:$0xff]  }
  0x35   : > { %v2082_v2 = vld [vmem:[%s2271_s9 + $0xcc] sm:$0xff]   ;;  %v2085_v3 = vld [vmem:[%s2271_s9 + $0x94] sm:$0xff]   ;;  %v2087_v5 = vld [vmem:[%s2271_s9 + $0x9c] sm:$0xff]  }
  0x36   : > { %1935 = vmatmul.mubr.msk.bf16.vlgmr.msra.gmra.mxu0 %vm527_vm0, %v2058_v41  ;;  %1925 = vmatmul.mubr.msk.bf16.vlgmr.msra.gmra.mxu1 %vm527_vm0, %v2057_v40  ;;  %v2084_v4 = vld [vmem:[%s2271_s9 + $0x4c] sm:$0xff]   ;;  %v2086_v6 = vld [vmem:[%s2271_s9 + $0x54] sm:$0xff]   ;;  %v2089_v7 = vld [vmem:[%s2271_s9 + $0xa4] sm:$0xff]  }
  0x37   : > { %1953 = vmatpush3.bf16.msra.mxu0 %v2059_v42  ;;  %1943 = vmatpush3.bf16.msra.mxu1 %v2056_v39  ;;  %v2088_v8 = vld [vmem:[%s2271_s9 + $0x5c] sm:$0xff]   ;;  %v2091_v9 = vld [vmem:[%s2271_s9 + $0xac] sm:$0xff]   ;;  %v2090_v10 = vld [vmem:[%s2271_s9 + $0x64] sm:$0xff]  }
  0x38   : > { %1928 = vmatprep.mubr.msk.bf16.mxu1 %vm527_vm0, %v2060_v43  ;;  %1938 = vmatprep.mubr.msk.bf16.mxu0 %vm527_vm0, %v2061_v44 }
  0x39   : > { %1962 = vmatprep.subr.bf16.mxu1 %v2066_v47  ;;  %1972 = vmatprep.subr.bf16.mxu0 %v2069_v50 }
  0x3e   : > { %1939 = vmatmul.mubr.msk.bf16.gmra.mxu0 %vm527_vm0, %v2063_v46  ;;  %1929 = vmatmul.mubr.msk.bf16.gmra.mxu1 %vm527_vm0, %v2062_v45 }
  0x3f   : > { %1954 = vmatprep.mubr.msk.bf16.mxu0 %vm527_vm0, %v2065_v48  ;;  %1944 = vmatprep.mubr.msk.bf16.mxu1 %vm527_vm0, %v2064_v49 }
  0x46   : > { %1955 = vmatmul.mubr.msk.bf16.vlgmr.msra.gmra.mxu0 %vm527_vm0, %v2068_v52  ;;  %1945 = vmatmul.mubr.msk.bf16.vlgmr.msra.gmra.mxu1 %vm527_vm0, %v2067_v51 }
  0x47   : > { %1973 = vmatpush3.bf16.msra.mxu0 %v2069_v50  ;;  %1963 = vmatpush3.bf16.msra.mxu1 %v2066_v47 }
  0x48   : > { %1948 = vmatprep.mubr.msk.bf16.mxu1 %vm527_vm0, %v2070_v53  ;;  %1958 = vmatprep.mubr.msk.bf16.mxu0 %vm527_vm0, %v2071_v54 }
  0x49   : > { %1982 = vmatprep.subr.bf16.mxu1 %v2076_v55  ;;  %1992 = vmatprep.subr.bf16.mxu0 %v2079_v56 }
  0x4e   : > { %1959 = vmatmul.mubr.msk.bf16.gmra.mxu0 %vm527_vm0, %v2073_v58  ;;  %1949 = vmatmul.mubr.msk.bf16.gmra.mxu1 %vm527_vm0, %v2072_v57 }
  0x4f   : > { %1974 = vmatprep.mubr.msk.bf16.mxu0 %vm527_vm0, %v2075_v59  ;;  %1964 = vmatprep.mubr.msk.bf16.mxu1 %vm527_vm0, %v2074_v60 }
  0x56   : > { %1975 = vmatmul.mubr.msk.bf16.vlgmr.msra.gmra.mxu0 %vm527_vm0, %v2078_v61  ;;  %1965 = vmatmul.mubr.msk.bf16.vlgmr.msra.gmra.mxu1 %vm527_vm0, %v2077_v62 }
  0x57   : > { %1993 = vmatpush3.bf16.msra.mxu0 %v2079_v56  ;;  %1983 = vmatpush3.bf16.msra.mxu1 %v2076_v55 }
  0x58   : > { %1968 = vmatprep.mubr.msk.bf16.mxu1 %vm527_vm0, %v2080_v63  ;;  %1978 = vmatprep.mubr.msk.bf16.mxu0 %vm527_vm0, %v2081_v0 }
  0x5e   : > { %1979 = vmatmul.mubr.msk.bf16.gmra.mxu0 %vm527_vm0, %v2083_v1  ;;  %1969 = vmatmul.mubr.msk.bf16.gmra.mxu1 %vm527_vm0, %v2082_v2 }
  0x5f   : > { %1994 = vmatprep.mubr.msk.bf16.mxu0 %vm527_vm0, %v2085_v3  ;;  %1984 = vmatprep.mubr.msk.bf16.mxu1 %vm527_vm0, %v2084_v4 }
  0x66   : > { %1995 = vmatmul.mubr.msk.bf16.vlgmr.msra.gmra.mxu0 %vm527_vm0, %v2087_v5  ;;  %1985 = vmatmul.mubr.msk.bf16.vlgmr.msra.gmra.mxu1 %vm527_vm0, %v2086_v6 }
  0x67   : > { %1998 = vmatprep.mubr.msk.bf16.mxu0 %vm527_vm0, %v2089_v7  ;;  %1988 = vmatprep.mubr.msk.bf16.mxu1 %vm527_vm0, %v2088_v8 }
  0x6e   : > { %1999 = vmatmul.mubr.msk.bf16.gmra.mxu0 %vm527_vm0, %v2091_v9  ;;  %1989 = vmatmul.mubr.msk.bf16.gmra.mxu1 %vm527_vm0, %v2090_v10 }
  0xee   : > { %v1916_v11 = vpop.f32.mrf.mxu0  ;;  %v1920_v12 = vpop.f32.mrf.mxu1 }
  0xf0   : > { %v574_v13 = vpop.f32.mrf.mxu0  ;;  %v590_v14 = vpop.f32.mrf.mxu1 }
  0xf2   : > { %v1917_v15 = vpop.f32.mrf.mxu0  ;;  %v1921_v16 = vpop.f32.mrf.mxu1 }
  0xf4   : > { %v577_v17 = vpop.f32.mrf.mxu0  ;;  %v2363_v18 = vpop.f32.mrf.mxu1 }
  0xf6   : > { %v1936_v19 = vpop.f32.mrf.mxu0  ;;  %v1926_v20 = vpop.f32.mrf.mxu1 }
  0xf7   : > { %v686_v51 = vadd.f32 %v1926_v20, %v1916_v11 }
  0xf8   : > { %v792_v21 = vpop.f32.mrf.mxu0  ;;  %v677_v22 = vpop.f32.mrf.mxu1 }
  0xf9   : > { %v678_v54 = vadd.f32 %v677_v22, %v574_v13  ;;  %v825_v57 = vadd.f32 %v1936_v19, %v686_v51 }
  0xfa   : > { %v1937_v23 = vpop.f32.mrf.mxu0  ;;  %v1927_v24 = vpop.f32.mrf.mxu1 }
  0xfb   : > { %v689_v58 = vadd.f32 %v1927_v24, %v1917_v15  ;;  %v823_v61 = vadd.f32 %v792_v21, %v678_v54 }
  0xfc   : > { %v795_v25 = vpop.f32.mrf.mxu0  ;;  %v680_v26 = vpop.f32.mrf.mxu1 }
  0xfd   : > { %v681_v62 = vadd.f32 %v680_v26, %v577_v17  ;;  %v826_v3 = vadd.f32 %v1937_v23, %v689_v58 }
  0xfe   : > { %v1940_v27 = vpop.f32.mrf.mxu0  ;;  %v1930_v28 = vpop.f32.mrf.mxu1 }
  0xff   : > { %v702_v1 = vadd.f32 %v1930_v28, %v1920_v12  ;;  %v824_v8 = vadd.f32 %v795_v25, %v681_v62 }
 0x100   : > { %v808_v29 = vpop.f32.mrf.mxu0  ;;  %v693_v30 = vpop.f32.mrf.mxu1 }
 0x101   : > { %v694_v6 = vadd.f32 %v693_v30, %v590_v14  ;;  %v829_v13 = vadd.f32 %v1940_v27, %v702_v1 }
 0x102   : > { %v1941_v31 = vpop.f32.mrf.mxu0  ;;  %v1931_v32 = vpop.f32.mrf.mxu1 }
 0x103   : > { %v705_v15 = vadd.f32 %v1931_v32, %v1921_v16  ;;  %v827_v22 = vadd.f32 %v808_v29, %v694_v6 }
 0x104   : > { %v2365_v33 = vpop.f32.mrf.mxu0  ;;  %v696_v34 = vpop.f32.mrf.mxu1 }
 0x105   : > { %v697_v23 = vadd.f32 %v696_v34, %v2363_v18  ;;  %v830_v30 = vadd.f32 %v1941_v31, %v705_v15 }
 0x106   : > { %v1956_v35 = vpop.f32.mrf.mxu0  ;;  %v1946_v36 = vpop.f32.mrf.mxu1 }
 0x107   : > { %v948_v63 = vadd.f32 %v1946_v36, %v825_v57  ;;  %v828_v29 = vadd.f32 %v2365_v33, %v697_v23 }
 0x108   : > { %v1038_v37 = vpop.f32.mrf.mxu0  ;;  %v915_v38 = vpop.f32.mrf.mxu1 }
 0x109   : > { %v946_v4 = vadd.f32 %v915_v38, %v823_v61  ;;  %v1071_v9 = vadd.f32 %v1956_v35, %v948_v63 }
 0x10a   : > { %v1957_v39 = vpop.f32.mrf.mxu0  ;;  %v1947_v40 = vpop.f32.mrf.mxu1 }
 0x10b   : > { %v949_v10 = vadd.f32 %v1947_v40, %v826_v3  ;;  %v1069_v17 = vadd.f32 %v1038_v37, %v946_v4 }
 0x10c   : > { %v1041_v41 = vpop.f32.mrf.mxu0  ;;  %v918_v42 = vpop.f32.mrf.mxu1 }
 0x10d   : > { %v947_v20 = vadd.f32 %v918_v42, %v824_v8  ;;  %v1072_v26 = vadd.f32 %v1957_v39, %v949_v10 }
 0x10e   : > { %v1960_v43 = vpop.f32.mrf.mxu0  ;;  %v1950_v44 = vpop.f32.mrf.mxu1 }
 0x10f   : > { %v952_v24 = vadd.f32 %v1950_v44, %v829_v13  ;;  %v1070_v32 = vadd.f32 %v1041_v41, %v947_v20  ;;  %v1863_v41 = vld [vmem:[%s2418_s2] ss:$0 sm:$0xff] }
 0x110   : > { %v2367_v45 = vpop.f32.mrf.mxu0  ;;  %v931_v46 = vpop.f32.mrf.mxu1 }
 0x111   : > { %v950_v27 = vadd.f32 %v931_v46, %v827_v22  ;;  %v1075_v38 = vadd.f32 %v1960_v43, %v952_v24 }
 0x112   : > { %v2369_v47 = vpop.f32.mrf.mxu0  ;;  %v1951_v48 = vpop.f32.mrf.mxu1 }
 0x113   : > { %v953_v18 = vadd.f32 %v1951_v48, %v830_v30  ;;  %v1073_v51 = vadd.f32 %v2367_v45, %v950_v27 }
 0x114   : > { %v2371_v49 = vpop.f32.mrf.mxu0  ;;  %v934_v50 = vpop.f32.mrf.mxu1 }
 0x115   : > { %v1076_v48 = vadd.f32 %v2369_v47, %v953_v18 }
 0x116   : > { %v1976_v52 = vpop.f32.mrf.mxu0  ;;  %v1966_v53 = vpop.f32.mrf.mxu1 }
 0x117   : > { %v1194_v21 = vadd.f32 %v1966_v53, %v1071_v9  ;;  %v951_v53 = vadd.f32 %v934_v50, %v828_v29 }
 0x118   : > { %v1283_v55 = vpop.f32.mrf.mxu0  ;;  %v1161_v56 = vpop.f32.mrf.mxu1 }
 0x119   : > { %v1192_v25 = vadd.f32 %v1161_v56, %v1069_v17  ;;  %v1316_v35 = vadd.f32 %v1976_v52, %v1194_v21 }
 0x11a   : > { %v1977_v59 = vpop.f32.mrf.mxu0  ;;  %v1967_v60 = vpop.f32.mrf.mxu1 }
 0x11b   : > { %v1195_v36 = vadd.f32 %v1967_v60, %v1072_v26  ;;  %v1314_v40 = vadd.f32 %v1283_v55, %v1192_v25 }
 0x11c   : > { %v1286_v0 = vpop.f32.mrf.mxu0  ;;  %v1164_v2 = vpop.f32.mrf.mxu1 }
 0x11d   : > { %v1193_v39 = vadd.f32 %v1164_v2, %v1070_v32  ;;  %v1317_v52 = vadd.f32 %v1977_v59, %v1195_v36  ;;  %v1074_v59 = vadd.f32 %v2371_v49, %v951_v53 }
 0x11e   : > { %v1980_v5 = vpop.f32.mrf.mxu0  ;;  %v1970_v7 = vpop.f32.mrf.mxu1 }
 0x11f   : > { %v1198_v31 = vadd.f32 %v1970_v7, %v1075_v38  ;;  %v1315_v50 = vadd.f32 %v1286_v0, %v1193_v39 }
 0x120   : > { %v1299_v11 = vpop.f32.mrf.mxu0  ;;  %v1177_v19 = vpop.f32.mrf.mxu1 }
 0x121   : > { %v1196_v55 = vadd.f32 %v1177_v19, %v1073_v51  ;;  %v1320_v61 = vadd.f32 %v1980_v5, %v1198_v31 }
 0x122   : > { %v1981_v12 = vpop.f32.mrf.mxu0  ;;  %v1971_v14 = vpop.f32.mrf.mxu1 }
 0x123   : > { %v1199_v63 = vadd.f32 %v1971_v14, %v1076_v48  ;;  %v1318_v4 = vadd.f32 %v1299_v11, %v1196_v55 }
 0x124   : > { %v1302_v28 = vpop.f32.mrf.mxu0  ;;  %v1180_v16 = vpop.f32.mrf.mxu1 }
 0x125   : > { %v1197_v0 = vadd.f32 %v1180_v16, %v1074_v59  ;;  %v1321_v5 = vadd.f32 %v1981_v12, %v1199_v63 }
 0x126   : > { %v1996_v37 = vpop.f32.mrf.mxu0  ;;  %v1986_v34 = vpop.f32.mrf.mxu1 }
 0x127   : > { %v1438_v42 = vadd.f32 %v1986_v34, %v1316_v35  ;;  %v1319_v11 = vadd.f32 %v1302_v28, %v1197_v0 }
 0x128   : > { %v1527_v44 = vpop.f32.mrf.mxu0  ;;  %v1405_v46 = vpop.f32.mrf.mxu1 }
 0x129   : > { %v1560_v54 = vadd.f32 %v1996_v37, %v1438_v42  ;;  %v1436_v33 = vadd.f32 %v1405_v46, %v1314_v40 }
 0x12a   : > { %v1997_v43 = vpop.f32.mrf.mxu0  ;;  %v1987_v45 = vpop.f32.mrf.mxu1 }
 0x12b   : > { %v1575_v56 = vadd.f32 %v1863_v41, %v1560_v54  ;;  %v1558_v57 = vadd.f32 %v1527_v44, %v1436_v33  ;;  %v1439_v58 = vadd.f32 %v1987_v45, %v1317_v52 }
 0x12c   : > { %v1530_v60 = vpop.f32.mrf.mxu0  ;;  %v1408_v62 = vpop.f32.mrf.mxu1 }
 0x12d   : > { %1583 = vst [vmem:[%s2390_s14 + $0x10] sm:$0xff] %v1575_v56  ;;  %v1573_v47 = vadd.f32 %v1863_v41, %v1558_v57  ;;  %v1561_v1 = vadd.f32 %v1997_v43, %v1439_v58  ;;  %v1437_v2 = vadd.f32 %v1408_v62, %v1315_v50 }
 0x12e   : > { %v2000_v3 = vpop.f32.mrf.mxu0  ;;  %v1990_v6 = vpop.f32.mrf.mxu1 }
 0x12f   : > { %1581 = vst [vmem:[%s2390_s14] sm:$0xff] %v1573_v47  ;;  %v1576_v7 = vadd.f32 %v1863_v41, %v1561_v1  ;;  %v1559_v8 = vadd.f32 %v1530_v60, %v1437_v2  ;;  %v1442_v9 = vadd.f32 %v1990_v6, %v1320_v61 }
 0x130   : > { %v1543_v10 = vpop.f32.mrf.mxu0  ;;  %v1421_v49 = vpop.f32.mrf.mxu1 }
 0x131   : > { %1584 = vst [vmem:[%s2390_s14 + $0x18] sm:$0xff] %v1576_v7  ;;  %v1574_v13 = vadd.f32 %v1863_v41, %v1559_v8  ;;  %v1564_v15 = vadd.f32 %v2000_v3, %v1442_v9  ;;  %v1440_v19 = vadd.f32 %v1421_v49, %v1318_v4 }
 0x132   : > { %v1991_v17 = vpop.f32.mrf.mxu1  ;;  %v2001_v20 = vpop.f32.mrf.mxu0 }
 0x133   : > { %1582 = vst [vmem:[%s2390_s14 + $0x8] sm:$0xff] %v1574_v13  ;;  %v1579_v21 = vadd.f32 %v1863_v41, %v1564_v15  ;;  %v1562_v22 = vadd.f32 %v1543_v10, %v1440_v19  ;;  %v1443_v23 = vadd.f32 %v1991_v17, %v1321_v5 }
 0x134   : > { %v1424_v24 = vpop.f32.mrf.mxu1  ;;  %v1546_v12 = vpop.f32.mrf.mxu0 }
 0x135   : > { %1587 = vst [vmem:[%s2390_s14 + $0x30] sm:$0xff] %v1579_v21  ;;  %v1577_v14 = vadd.f32 %v1863_v41, %v1562_v22  ;;  %v1565_v26 = vadd.f32 %v2001_v20, %v1443_v23  ;;  %v1441_v25 = vadd.f32 %v1424_v24, %v1319_v11 }
 0x137   : > { %1585 = vst [vmem:[%s2390_s14 + $0x20] sm:$0xff] %v1577_v14  ;;  %v1580_v30 = vadd.f32 %v1863_v41, %v1565_v26  ;;  %v1563_v27 = vadd.f32 %v1546_v12, %v1441_v25 }
 0x139   : > { %1588 = vst [vmem:[%s2390_s14 + $0x38] sm:$0xff] %v1580_v30  ;;  %v1578_v16 = vadd.f32 %v1863_v41, %v1563_v27 }
 0x13b   : > { %1586 = vst [vmem:[%s2390_s14 + $0x28] sm:$0xff] %v1578_v16 }
 0x13c PF: > { %s13_s16 = sadd.s32 1, %s2130_s16   ;;  %s2420_s12 = smov %s2118_s13 }
 0x13d   : > { %p10_p10 = scmp.ge.s32.totalorder %s13_s16, 4   ;;  %s2421_s13 = smov %s2187_s20 }
 0x13e   : > { %s2422_s14 = smov %s2126_s15  ;;  %s2423_s15 = smov %s2425_s17 }
 0x13f   :  { %12 = sbr.rel (!%p10_p10) target bundleno = 3 (0x3), region = 127 }

</bundles_post_ra>
